<compile_context>
chip_gen: v7x
topology: tpu7x:2x2x1
jax: 0.10.0
libtpu: 0.0.40
codegen_flags: <defaults>
</compile_context>

<pallas_src>
import functools

import jax
import jax.numpy as jnp
from jax.experimental import pallas as pl
from jax.experimental.pallas import tpu as pltpu


def _round_up(n, m):
    return ((n + m - 1) // m) * m


def _pad_to(a, shape):
    pads = [(0, s - d) for d, s in zip(a.shape, shape)]
    return jnp.pad(a, pads) if any(p for _, p in pads) else a


def _pick_time_chunk(T, Bp):
    """Time-chunk length: aim for Bp*TT ~ 512 rows (feeds the 256-row MXU on
    v6e/v7x, 128-row on v5e), multiple of 8, capped at 128 steps."""
    target_rows = 512
    tt = max(8, (target_rows // Bp) // 8 * 8)
    tt = min(tt, 128)
    tt = min(tt, _round_up(T, 8))
    return tt


def rnn_chunk_kernel(g_ref, h0_ref, whh_ref, wout_ref, bout_ref,
                     out_ref, hfinal_ref, h_carry, h_buf, *, seq_len):
    """One grid step = TT time steps of the recurrence + one hoisted out-proj."""
    c = pl.program_id(0)
    TT, Bp, Hp = g_ref.shape
    Op = wout_ref.shape[1]
    has_tail = (seq_len % TT) != 0            # static Python bool

    # Load the initial hidden state once, on the first chunk.
    @pl.when(c == 0)
    def _():
        h_carry[...] = h0_ref[...]

    # ---- Serial recurrence: only h @ W_hh + tanh per step (TT static -> unrolled).
    whh = whh_ref[...]
    h = h_carry[...]
    base_t = c * TT
    for tt in range(TT):                      # only h (1 vreg at Hp=128) is carried
        h_new = jnp.tanh(g_ref[tt] +
                         jnp.dot(h, whh, preferred_element_type=jnp.float32))
        if has_tail:
            # Freeze h past the true sequence end (padded tail chunk).
            h = jnp.where(base_t + tt < seq_len, h_new, h)
        else:
            h = h_new
        h_buf[tt] = h                         # full-tile (Bp, Hp) unmasked store
    h_carry[...] = h

    # ---- Hoisted output projection for the whole chunk: one tall MXU matmul,
    #      stored as a single lane-dense time-major (TT, Bp, Op) slab.
    h2d = h_buf[...].reshape(TT * Bp, Hp)
    o2d = jnp.dot(h2d, wout_ref[...],
                  preferred_element_type=jnp.float32) + bout_ref[...]
    out_ref[...] = o2d.reshape(TT, Bp, Op).astype(out_ref.dtype)

    # Final hidden state: written once, on the last chunk only.
    @pl.when(c == pl.num_programs(0) - 1)
    def _():
        hfinal_ref[...] = h.astype(hfinal_ref.dtype)


def my_rnn_forward(x, params, hidden=None):
    """x: (B, T, D_in) float32. Returns (out: (B, T, O), hidden: (1, B, H))."""
    B, T, Din = x.shape
    H = params["whh"].shape[0]
    O = params["wout"].shape[1]

    Bp = _round_up(B, 8)
    Hp = _round_up(H, 128)
    Op = _round_up(O, 128)
    TT = _pick_time_chunk(T, Bp)
    n_chunks = pl.cdiv(T, TT)
    Tp = n_chunks * TT

    # ---- Input projection hoisted out of the kernel (no serial dependence, no
    #      Din padding): one XLA matmul over the whole sequence, time-major.
    g = jnp.einsum("btd,dh->tbh", x.astype(jnp.float32), params["wih"]) + params["b"]
    g_p = _pad_to(g, (Tp, Bp, Hp))            # padded lanes / rows / steps are exact zeros

    if hidden is None:
        h0 = jnp.zeros((Bp, Hp), jnp.float32)
    else:
        h0 = _pad_to(hidden.reshape(B, H).astype(jnp.float32), (Bp, Hp))

    whh_p = _pad_to(params["whh"], (Hp, Hp))
    wout_p = _pad_to(params["wout"], (Hp, Op))
    bout_p = _pad_to(params["bout"], (1, Op))

    # Advisory cost hint so XLA schedules the surrounding pad/transpose sensibly.
    cost = pl.CostEstimate(
        flops=int(2 * Tp * Bp * (Hp * Hp + Hp * Op)),
        transcendentals=int(Tp * Bp * Hp),
        bytes_accessed=int(4 * (Tp * Bp * (Hp + Op) + Hp * (Hp + Op) + Op + 2 * Bp * Hp)),
    )

    # VMEM budget from the actual block sizes (double-buffered streams, single
    # weights copy counted twice for safety), capped at 48 MiB (v7x-safe).
    est = 4 * (2 * TT * Bp * Hp + 2 * TT * Bp * Op
               + 2 * (Hp * Hp + Hp * Op + 8 * Op + 2 * Bp * Hp)
               + (TT + 1) * Bp * Hp)
    vmem_limit = int(min(48 * 1024 * 1024, max(8 * 1024 * 1024, 2 * est)))

    out_tm, h_final = pl.pallas_call(
        functools.partial(rnn_chunk_kernel, seq_len=T),
        out_shape=(
            jax.ShapeDtypeStruct((Tp, Bp, Op), jnp.float32),
            jax.ShapeDtypeStruct((Bp, Hp), jnp.float32),
        ),
        grid_spec=pltpu.PrefetchScalarGridSpec(
            num_scalar_prefetch=0,
            grid=(n_chunks,),
            in_specs=[
                pl.BlockSpec((TT, Bp, Hp), lambda c: (c, 0, 0)),   # g chunk (time-major)
                pl.BlockSpec((Bp, Hp), lambda c: (0, 0)),          # h0
                pl.BlockSpec((Hp, Hp), lambda c: (0, 0)),          # W_hh (pre-transposed)
                pl.BlockSpec((Hp, Op), lambda c: (0, 0)),          # W_out (pre-transposed)
                pl.BlockSpec((1, Op), lambda c: (0, 0)),           # b_out
            ],
            out_specs=[
                pl.BlockSpec((TT, Bp, Op), lambda c: (c, 0, 0)),   # lane-dense out chunk
                pl.BlockSpec((Bp, Hp), lambda c: (0, 0)),          # final hidden
            ],
            scratch_shapes=[
                pltpu.VMEM((Bp, Hp), jnp.float32),       # recurrent carry
                pltpu.VMEM((TT, Bp, Hp), jnp.float32),   # per-chunk hidden history
            ],
        ),
        compiler_params=pltpu.CompilerParams(
            dimension_semantics=("arbitrary",),          # serial time recurrence
            vmem_limit_bytes=vmem_limit,
        ),
        cost_estimate=cost,
    )(g_p, h0, whh_p, wout_p, bout_p)

    out = jnp.transpose(out_tm[:T, :B, :O], (1, 0, 2))   # (B, T, O)
    return out, h_final[:B, :H][None]                    # (1, B, H) like nn.RNN


def init_params(key, input_dim, hidden_dim, output_dim):
    """Deterministic PyTorch-like init: U(-1/sqrt(H), 1/sqrt(H)) everywhere."""
    ks = jax.random.split(key, 6)
    bound = 1.0 / jnp.sqrt(hidden_dim)
    wih = jax.random.uniform(ks[0], (input_dim, hidden_dim), jnp.float32, -bound, bound)
    whh = jax.random.uniform(ks[1], (hidden_dim, hidden_dim), jnp.float32, -bound, bound)
    b_ih = jax.random.uniform(ks[2], (1, hidden_dim), jnp.float32, -bound, bound)
    b_hh = jax.random.uniform(ks[3], (1, hidden_dim), jnp.float32, -bound, bound)
    wout = jax.random.uniform(ks[4], (hidden_dim, output_dim), jnp.float32, -bound, bound)
    bout = jax.random.uniform(ks[5], (1, output_dim), jnp.float32, -bound, bound)
    return {"wih": wih, "whh": whh, "b": b_ih + b_hh, "wout": wout, "bout": bout}


def reference_forward(x, params):
    """Pure-JAX reference for sanity checking (matches the PyTorch per-step loop)."""
    B, T, _ = x.shape
    H = params["whh"].shape[0]
    h = jnp.zeros((B, H), jnp.float32)
    outs = []
    for t in range(T):
        h = jnp.tanh(x[:, t] @ params["wih"] + h @ params["whh"] + params["b"])
        outs.append(h @ params["wout"] + params["bout"])
    return jnp.stack(outs, axis=1), h[None]


if __name__ == "__main__":
    B, T = 2, 8
    input_dim, hidden_dim, output_dim = 4, 32, 8

    key = jax.random.PRNGKey(0)
    kx, kp = jax.random.split(key)
    x = jax.random.normal(kx, (B, T, input_dim), jnp.float32)
    params = init_params(kp, input_dim, hidden_dim, output_dim)

    out, hidden = my_rnn_forward(x, params)
    out = jax.block_until_ready(out)
    hidden = jax.block_until_ready(hidden)

    out_ref, hidden_ref = reference_forward(x, params)
    assert out.shape == (B, T, output_dim)
    assert hidden.shape == (1, B, hidden_dim)
    assert jnp.allclose(out, out_ref, atol=1e-4, rtol=1e-4)
    assert jnp.allclose(hidden, hidden_ref, atol=1e-4, rtol=1e-4)

    print("KERNEL_OK")
</pallas_src>

<mosaic_0001>
module attributes {stable_mosaic.version = 11 : i64} {
  func.func @rnn_chunk_kernel(%arg0: i32, %arg1: memref<8x8x128xf32, #tpu.memory_space<vmem>>, %arg2: memref<8x128xf32, #tpu.memory_space<vmem>>, %arg3: memref<128x128xf32, #tpu.memory_space<vmem>>, %arg4: memref<128x128xf32, #tpu.memory_space<vmem>>, %arg5: memref<1x128xf32, #tpu.memory_space<vmem>>, %arg6: memref<8x8x128xf32, #tpu.memory_space<vmem>>, %arg7: memref<8x128xf32, #tpu.memory_space<vmem>>, %arg8: memref<8x128xf32, #tpu.memory_space<vmem>>, %arg9: memref<8x8x128xf32, #tpu.memory_space<vmem>>) attributes {dimension_semantics = [#tpu.dimension_semantics<arbitrary>], iteration_bounds = array<i64: 1>, scalar_prefetch = 0 : i64, scratch_operands = 2 : i64, tpu.core_type = #tpu.core_type<tc>, window_params = [{transform_indices = @transform_0, window_bounds = array<i64: 8, 8, 128>}, {pipeline_mode = #tpu.pipeline_mode<synchronous>, transform_indices = @transform_1, window_bounds = array<i64: 8, 128>}, {pipeline_mode = #tpu.pipeline_mode<synchronous>, transform_indices = @transform_2, window_bounds = array<i64: 128, 128>}, {pipeline_mode = #tpu.pipeline_mode<synchronous>, transform_indices = @transform_3, window_bounds = array<i64: 128, 128>}, {pipeline_mode = #tpu.pipeline_mode<synchronous>, transform_indices = @transform_4, window_bounds = array<i64: 1, 128>}, {transform_indices = @transform_5, window_bounds = array<i64: 8, 8, 128>}, {pipeline_mode = #tpu.pipeline_mode<synchronous>, transform_indices = @transform_6, window_bounds = array<i64: 8, 128>}]} {
    %c0_i32 = arith.constant 0 : i32
    %0 = arith.cmpi eq, %arg0, %c0_i32 : i32
    %1 = arith.extui %0 : i1 to i32
    %c0_i32_0 = arith.constant 0 : i32
    %2 = arith.cmpi ne, %1, %c0_i32_0 : i32
    scf.if %2 {
      %c0_67 = arith.constant 0 : index
      %c0_68 = arith.constant 0 : index
      %82 = vector.load %arg2[%c0_67, %c0_68] : memref<8x128xf32, #tpu.memory_space<vmem>>, vector<8x128xf32>
      %c0_69 = arith.constant 0 : index
      %c0_70 = arith.constant 0 : index
      %83 = vector.load %arg8[%c0_69, %c0_70] : memref<8x128xf32, #tpu.memory_space<vmem>>, vector<8x128xf32>
      tpu.vector_store %arg8[%c0_69, %c0_70], %82 {strides = array<i32>} : memref<8x128xf32, #tpu.memory_space<vmem>>, vector<8x128xf32>,
    } else {
    }
    %c0 = arith.constant 0 : index
    %c0_1 = arith.constant 0 : index
    %3 = vector.load %arg3[%c0, %c0_1] : memref<128x128xf32, #tpu.memory_space<vmem>>, vector<128x128xf32>
    %c0_2 = arith.constant 0 : index
    %c0_3 = arith.constant 0 : index
    %4 = vector.load %arg8[%c0_2, %c0_3] : memref<8x128xf32, #tpu.memory_space<vmem>>, vector<8x128xf32>
    %c0_4 = arith.constant 0 : index
    %c0_5 = arith.constant 0 : index
    %c0_6 = arith.constant 0 : index
    %5 = vector.load %arg1[%c0_4, %c0_5, %c0_6] : memref<8x8x128xf32, #tpu.memory_space<vmem>>, vector<1x8x128xf32>
    %6 = vector.shape_cast %5 : vector<1x8x128xf32> to vector<8x128xf32>
    %cst = arith.constant dense<0.000000e+00> : vector<8x128xf32>
    %7 = tpu.matmul %4, %3, %cst {dimension_numbers = #tpu.dot_dimension_numbers<[1], [0], [0], [1], [0, 0, 1, 1], [], []>} : vector<8x128xf32>, vector<128x128xf32>, vector<8x128xf32> -> vector<8x128xf32>
    %8 = arith.addf %6, %7 : vector<8x128xf32>
    %9 = math.tanh %8 : vector<8x128xf32>
    %c0_7 = arith.constant 0 : index
    %c0_8 = arith.constant 0 : index
    %c0_9 = arith.constant 0 : index
    %10 = vector.load %arg9[%c0_7, %c0_8, %c0_9] : memref<8x8x128xf32, #tpu.memory_space<vmem>>, vector<1x8x128xf32>
    %11 = vector.shape_cast %10 : vector<1x8x128xf32> to vector<8x128xf32>
    %12 = vector.shape_cast %9 : vector<8x128xf32> to vector<1x8x128xf32>
    tpu.vector_store %arg9[%c0_7, %c0_8, %c0_9], %12 {strides = array<i32>} : memref<8x8x128xf32, #tpu.memory_space<vmem>>, vector<1x8x128xf32>,
    %c1 = arith.constant 1 : index
    %c0_10 = arith.constant 0 : index
    %c0_11 = arith.constant 0 : index
    %13 = vector.load %arg1[%c1, %c0_10, %c0_11] : memref<8x8x128xf32, #tpu.memory_space<vmem>>, vector<1x8x128xf32>
    %14 = vector.shape_cast %13 : vector<1x8x128xf32> to vector<8x128xf32>
    %cst_12 = arith.constant dense<0.000000e+00> : vector<8x128xf32>
    %15 = tpu.matmul %9, %3, %cst_12 {dimension_numbers = #tpu.dot_dimension_numbers<[1], [0], [0], [1], [0, 0, 1, 1], [], []>} : vector<8x128xf32>, vector<128x128xf32>, vector<8x128xf32> -> vector<8x128xf32>
    %16 = arith.addf %14, %15 : vector<8x128xf32>
    %17 = math.tanh %16 : vector<8x128xf32>
    %c1_13 = arith.constant 1 : index
    %c0_14 = arith.constant 0 : index
    %c0_15 = arith.constant 0 : index
    %18 = vector.load %arg9[%c1_13, %c0_14, %c0_15] : memref<8x8x128xf32, #tpu.memory_space<vmem>>, vector<1x8x128xf32>
    %19 = vector.shape_cast %18 : vector<1x8x128xf32> to vector<8x128xf32>
    %20 = vector.shape_cast %17 : vector<8x128xf32> to vector<1x8x128xf32>
    tpu.vector_store %arg9[%c1_13, %c0_14, %c0_15], %20 {strides = array<i32>} : memref<8x8x128xf32, #tpu.memory_space<vmem>>, vector<1x8x128xf32>,
    %c2 = arith.constant 2 : index
    %c0_16 = arith.constant 0 : index
    %c0_17 = arith.constant 0 : index
    %21 = vector.load %arg1[%c2, %c0_16, %c0_17] : memref<8x8x128xf32, #tpu.memory_space<vmem>>, vector<1x8x128xf32>
    %22 = vector.shape_cast %21 : vector<1x8x128xf32> to vector<8x128xf32>
    %cst_18 = arith.constant dense<0.000000e+00> : vector<8x128xf32>
    %23 = tpu.matmul %17, %3, %cst_18 {dimension_numbers = #tpu.dot_dimension_numbers<[1], [0], [0], [1], [0, 0, 1, 1], [], []>} : vector<8x128xf32>, vector<128x128xf32>, vector<8x128xf32> -> vector<8x128xf32>
    %24 = arith.addf %22, %23 : vector<8x128xf32>
    %25 = math.tanh %24 : vector<8x128xf32>
    %c2_19 = arith.constant 2 : index
    %c0_20 = arith.constant 0 : index
    %c0_21 = arith.constant 0 : index
    %26 = vector.load %arg9[%c2_19, %c0_20, %c0_21] : memref<8x8x128xf32, #tpu.memory_space<vmem>>, vector<1x8x128xf32>
    %27 = vector.shape_cast %26 : vector<1x8x128xf32> to vector<8x128xf32>
    %28 = vector.shape_cast %25 : vector<8x128xf32> to vector<1x8x128xf32>
    tpu.vector_store %arg9[%c2_19, %c0_20, %c0_21], %28 {strides = array<i32>} : memref<8x8x128xf32, #tpu.memory_space<vmem>>, vector<1x8x128xf32>,
    %c3 = arith.constant 3 : index
    %c0_22 = arith.constant 0 : index
    %c0_23 = arith.constant 0 : index
    %29 = vector.load %arg1[%c3, %c0_22, %c0_23] : memref<8x8x128xf32, #tpu.memory_space<vmem>>, vector<1x8x128xf32>
    %30 = vector.shape_cast %29 : vector<1x8x128xf32> to vector<8x128xf32>
    %cst_24 = arith.constant dense<0.000000e+00> : vector<8x128xf32>
    %31 = tpu.matmul %25, %3, %cst_24 {dimension_numbers = #tpu.dot_dimension_numbers<[1], [0], [0], [1], [0, 0, 1, 1], [], []>} : vector<8x128xf32>, vector<128x128xf32>, vector<8x128xf32> -> vector<8x128xf32>
    %32 = arith.addf %30, %31 : vector<8x128xf32>
    %33 = math.tanh %32 : vector<8x128xf32>
    %c3_25 = arith.constant 3 : index
    %c0_26 = arith.constant 0 : index
    %c0_27 = arith.constant 0 : index
    %34 = vector.load %arg9[%c3_25, %c0_26, %c0_27] : memref<8x8x128xf32, #tpu.memory_space<vmem>>, vector<1x8x128xf32>
    %35 = vector.shape_cast %34 : vector<1x8x128xf32> to vector<8x128xf32>
    %36 = vector.shape_cast %33 : vector<8x128xf32> to vector<1x8x128xf32>
    tpu.vector_store %arg9[%c3_25, %c0_26, %c0_27], %36 {strides = array<i32>} : memref<8x8x128xf32, #tpu.memory_space<vmem>>, vector<1x8x128xf32>,
    %c4 = arith.constant 4 : index
    %c0_28 = arith.constant 0 : index
    %c0_29 = arith.constant 0 : index
    %37 = vector.load %arg1[%c4, %c0_28, %c0_29] : memref<8x8x128xf32, #tpu.memory_space<vmem>>, vector<1x8x128xf32>
    %38 = vector.shape_cast %37 : vector<1x8x128xf32> to vector<8x128xf32>
    %cst_30 = arith.constant dense<0.000000e+00> : vector<8x128xf32>
    %39 = tpu.matmul %33, %3, %cst_30 {dimension_numbers = #tpu.dot_dimension_numbers<[1], [0], [0], [1], [0, 0, 1, 1], [], []>} : vector<8x128xf32>, vector<128x128xf32>, vector<8x128xf32> -> vector<8x128xf32>
    %40 = arith.addf %38, %39 : vector<8x128xf32>
    %41 = math.tanh %40 : vector<8x128xf32>
    %c4_31 = arith.constant 4 : index
    %c0_32 = arith.constant 0 : index
    %c0_33 = arith.constant 0 : index
    %42 = vector.load %arg9[%c4_31, %c0_32, %c0_33] : memref<8x8x128xf32, #tpu.memory_space<vmem>>, vector<1x8x128xf32>
    %43 = vector.shape_cast %42 : vector<1x8x128xf32> to vector<8x128xf32>
    %44 = vector.shape_cast %41 : vector<8x128xf32> to vector<1x8x128xf32>
    tpu.vector_store %arg9[%c4_31, %c0_32, %c0_33], %44 {strides = array<i32>} : memref<8x8x128xf32, #tpu.memory_space<vmem>>, vector<1x8x128xf32>,
    %c5 = arith.constant 5 : index
    %c0_34 = arith.constant 0 : index
    %c0_35 = arith.constant 0 : index
    %45 = vector.load %arg1[%c5, %c0_34, %c0_35] : memref<8x8x128xf32, #tpu.memory_space<vmem>>, vector<1x8x128xf32>
    %46 = vector.shape_cast %45 : vector<1x8x128xf32> to vector<8x128xf32>
    %cst_36 = arith.constant dense<0.000000e+00> : vector<8x128xf32>
    %47 = tpu.matmul %41, %3, %cst_36 {dimension_numbers = #tpu.dot_dimension_numbers<[1], [0], [0], [1], [0, 0, 1, 1], [], []>} : vector<8x128xf32>, vector<128x128xf32>, vector<8x128xf32> -> vector<8x128xf32>
    %48 = arith.addf %46, %47 : vector<8x128xf32>
    %49 = math.tanh %48 : vector<8x128xf32>
    %c5_37 = arith.constant 5 : index
    %c0_38 = arith.constant 0 : index
    %c0_39 = arith.constant 0 : index
    %50 = vector.load %arg9[%c5_37, %c0_38, %c0_39] : memref<8x8x128xf32, #tpu.memory_space<vmem>>, vector<1x8x128xf32>
    %51 = vector.shape_cast %50 : vector<1x8x128xf32> to vector<8x128xf32>
    %52 = vector.shape_cast %49 : vector<8x128xf32> to vector<1x8x128xf32>
    tpu.vector_store %arg9[%c5_37, %c0_38, %c0_39], %52 {strides = array<i32>} : memref<8x8x128xf32, #tpu.memory_space<vmem>>, vector<1x8x128xf32>,
    %c6 = arith.constant 6 : index
    %c0_40 = arith.constant 0 : index
    %c0_41 = arith.constant 0 : index
    %53 = vector.load %arg1[%c6, %c0_40, %c0_41] : memref<8x8x128xf32, #tpu.memory_space<vmem>>, vector<1x8x128xf32>
    %54 = vector.shape_cast %53 : vector<1x8x128xf32> to vector<8x128xf32>
    %cst_42 = arith.constant dense<0.000000e+00> : vector<8x128xf32>
    %55 = tpu.matmul %49, %3, %cst_42 {dimension_numbers = #tpu.dot_dimension_numbers<[1], [0], [0], [1], [0, 0, 1, 1], [], []>} : vector<8x128xf32>, vector<128x128xf32>, vector<8x128xf32> -> vector<8x128xf32>
    %56 = arith.addf %54, %55 : vector<8x128xf32>
    %57 = math.tanh %56 : vector<8x128xf32>
    %c6_43 = arith.constant 6 : index
    %c0_44 = arith.constant 0 : index
    %c0_45 = arith.constant 0 : index
    %58 = vector.load %arg9[%c6_43, %c0_44, %c0_45] : memref<8x8x128xf32, #tpu.memory_space<vmem>>, vector<1x8x128xf32>
    %59 = vector.shape_cast %58 : vector<1x8x128xf32> to vector<8x128xf32>
    %60 = vector.shape_cast %57 : vector<8x128xf32> to vector<1x8x128xf32>
    tpu.vector_store %arg9[%c6_43, %c0_44, %c0_45], %60 {strides = array<i32>} : memref<8x8x128xf32, #tpu.memory_space<vmem>>, vector<1x8x128xf32>,
    %c7 = arith.constant 7 : index
    %c0_46 = arith.constant 0 : index
    %c0_47 = arith.constant 0 : index
    %61 = vector.load %arg1[%c7, %c0_46, %c0_47] : memref<8x8x128xf32, #tpu.memory_space<vmem>>, vector<1x8x128xf32>
    %62 = vector.shape_cast %61 : vector<1x8x128xf32> to vector<8x128xf32>
    %cst_48 = arith.constant dense<0.000000e+00> : vector<8x128xf32>
    %63 = tpu.matmul %57, %3, %cst_48 {dimension_numbers = #tpu.dot_dimension_numbers<[1], [0], [0], [1], [0, 0, 1, 1], [], []>} : vector<8x128xf32>, vector<128x128xf32>, vector<8x128xf32> -> vector<8x128xf32>
    %64 = arith.addf %62, %63 : vector<8x128xf32>
    %65 = math.tanh %64 : vector<8x128xf32>
    %c7_49 = arith.constant 7 : index
    %c0_50 = arith.constant 0 : index
    %c0_51 = arith.constant 0 : index
    %66 = vector.load %arg9[%c7_49, %c0_50, %c0_51] : memref<8x8x128xf32, #tpu.memory_space<vmem>>, vector<1x8x128xf32>
    %67 = vector.shape_cast %66 : vector<1x8x128xf32> to vector<8x128xf32>
    %68 = vector.shape_cast %65 : vector<8x128xf32> to vector<1x8x128xf32>
    tpu.vector_store %arg9[%c7_49, %c0_50, %c0_51], %68 {strides = array<i32>} : memref<8x8x128xf32, #tpu.memory_space<vmem>>, vector<1x8x128xf32>,
    %c0_52 = arith.constant 0 : index
    %c0_53 = arith.constant 0 : index
    %69 = vector.load %arg8[%c0_52, %c0_53] : memref<8x128xf32, #tpu.memory_space<vmem>>, vector<8x128xf32>
    tpu.vector_store %arg8[%c0_52, %c0_53], %65 {strides = array<i32>} : memref<8x128xf32, #tpu.memory_space<vmem>>, vector<8x128xf32>,
    %c0_54 = arith.constant 0 : index
    %c0_55 = arith.constant 0 : index
    %c0_56 = arith.constant 0 : index
    %70 = vector.load %arg9[%c0_54, %c0_55, %c0_56] : memref<8x8x128xf32, #tpu.memory_space<vmem>>, vector<8x8x128xf32>
    %71 = vector.shape_cast %70 : vector<8x8x128xf32> to vector<64x128xf32>
    %c0_57 = arith.constant 0 : index
    %c0_58 = arith.constant 0 : index
    %72 = vector.load %arg4[%c0_57, %c0_58] : memref<128x128xf32, #tpu.memory_space<vmem>>, vector<128x128xf32>
    %cst_59 = arith.constant dense<0.000000e+00> : vector<64x128xf32>
    %73 = tpu.matmul %71, %72, %cst_59 {dimension_numbers = #tpu.dot_dimension_numbers<[1], [0], [0], [1], [0, 0, 1, 1], [], []>} : vector<64x128xf32>, vector<128x128xf32>, vector<64x128xf32> -> vector<64x128xf32>
    %c0_60 = arith.constant 0 : index
    %c0_61 = arith.constant 0 : index
    %74 = vector.load %arg5[%c0_60, %c0_61] : memref<1x128xf32, #tpu.memory_space<vmem>>, vector<1x128xf32>
    %75 = vector.broadcast %74 : vector<1x128xf32> to vector<64x128xf32>
    %76 = arith.addf %73, %75 : vector<64x128xf32>
    %77 = vector.shape_cast %76 : vector<64x128xf32> to vector<8x8x128xf32>
    %c0_62 = arith.constant 0 : index
    %c0_63 = arith.constant 0 : index
    %c0_64 = arith.constant 0 : index
    %78 = vector.load %arg6[%c0_62, %c0_63, %c0_64] : memref<8x8x128xf32, #tpu.memory_space<vmem>>, vector<8x8x128xf32>
    tpu.vector_store %arg6[%c0_62, %c0_63, %c0_64], %77 {strides = array<i32>} : memref<8x8x128xf32, #tpu.memory_space<vmem>>, vector<8x8x128xf32>,
    %c0_i32_65 = arith.constant 0 : i32
    %79 = arith.cmpi eq, %arg0, %c0_i32_65 : i32
    %80 = arith.extui %79 : i1 to i32
    %c0_i32_66 = arith.constant 0 : i32
    %81 = arith.cmpi ne, %80, %c0_i32_66 : i32
    scf.if %81 {
      %c0_67 = arith.constant 0 : index
      %c0_68 = arith.constant 0 : index
      %82 = vector.load %arg7[%c0_67, %c0_68] : memref<8x128xf32, #tpu.memory_space<vmem>>, vector<8x128xf32>
      tpu.vector_store %arg7[%c0_67, %c0_68], %65 {strides = array<i32>} : memref<8x128xf32, #tpu.memory_space<vmem>>, vector<8x128xf32>,
    } else {
    }
    return
  }
  func.func @transform_0(%arg0: i32) -> (i32, i32, i32) {
    %c0_i32 = arith.constant 0 : i32
    %c0_i32_0 = arith.constant 0 : i32
    %c0_i32_1 = arith.constant 0 : i32
    return %arg0, %c0_i32, %c0_i32_0 : i32, i32, i32
  }
  func.func @transform_1(%arg0: i32) -> (i32, i32) {
    %c0_i32 = arith.constant 0 : i32
    %c0_i32_0 = arith.constant 0 : i32
    %c0_i32_1 = arith.constant 0 : i32
    return %c0_i32, %c0_i32_0 : i32, i32
  }
  func.func @transform_2(%arg0: i32) -> (i32, i32) {
    %c0_i32 = arith.constant 0 : i32
    %c0_i32_0 = arith.constant 0 : i32
    %c0_i32_1 = arith.constant 0 : i32
    return %c0_i32, %c0_i32_0 : i32, i32
  }
  func.func @transform_3(%arg0: i32) -> (i32, i32) {
    %c0_i32 = arith.constant 0 : i32
    %c0_i32_0 = arith.constant 0 : i32
    %c0_i32_1 = arith.constant 0 : i32
    return %c0_i32, %c0_i32_0 : i32, i32
  }
  func.func @transform_4(%arg0: i32) -> (i32, i32) {
    %c0_i32 = arith.constant 0 : i32
    %c0_i32_0 = arith.constant 0 : i32
    %c0_i32_1 = arith.constant 0 : i32
    return %c0_i32, %c0_i32_0 : i32, i32
  }
  func.func @transform_5(%arg0: i32) -> (i32, i32, i32) {
    %c0_i32 = arith.constant 0 : i32
    %c0_i32_0 = arith.constant 0 : i32
    %c0_i32_1 = arith.constant 0 : i32
    return %arg0, %c0_i32, %c0_i32_0 : i32, i32, i32
  }
  func.func @transform_6(%arg0: i32) -> (i32, i32) {
    %c0_i32 = arith.constant 0 : i32
    %c0_i32_0 = arith.constant 0 : i32
    %c0_i32_1 = arith.constant 0 : i32
    return %c0_i32, %c0_i32_0 : i32, i32
  }
}

</mosaic_0001>

<bundles_post_ra>
// kernel: tpu_custom_call.1
= control target key start
LH: loop header
LB: loop body
LE: loop exit
PB: predicated region body
PF: predicated region fallthrough
CT: control target
= control target key end

     0   :  { %12 = vsyncpa [#allocation5], 0  ;;  %s2093_s0 = inlined_call_operand.hbm [shape: f32[8,8,128], index: 0, kind: input, shape index: {}]   ;;  %s2094_s1 = inlined_call_operand.hbm [shape: f32[8,128], index: 1, kind: input, shape index: {}]   ;;  %s2095_s2 = inlined_call_operand.hbm [shape: f32[128,128], index: 2, kind: input, shape index: {}]   ;;  %s2096_s3 = inlined_call_operand.hbm [shape: f32[128,128], index: 3, kind: input, shape index: {}]   ;;  %s2097_s4 = inlined_call_operand.vmem [shape: f32[1,128], index: 4, kind: input, shape index: {}]   ;;  %s2098_s5 = inlined_call_operand.hbm [shape: f32[8,8,128], index: 5, kind: output, shape index: {0}]   ;;  %s2099_s6 = inlined_call_operand.hbm [shape: f32[8,128], index: 6, kind: output, shape index: {1}]  }
   0x1   :  { %13 = vsyncpa [#allocation8], 0 }
   0x2   :  { %14 = vsyncpa [#allocation11], 0 }
   0x3   :  { %15 = vsyncpa [#allocation6], 0 }
   0x4   :  { %16 = vsyncpa [#allocation14], 0  ;;  %s1766_s21 = smov [#allocation7]   ;;  %s1767_s23 = smov [#allocation4]  }
   0x5   :  { %s35_s22 = sshll.u32 %s1766_s21, 4  ;;  %s22_s24 = sshll.u32 %s1767_s23, 4  ;;  %s36_s22 = int_to_ptr.vmem [resolvable:$true] %s35_s22  ;;  %s1812_s24 = int_to_ptr.vmem [resolvable:$true] %s22_s24 }
   0x6   :  { %s1624_s27 = scalar_lea.hbm %s2094_s1, 128 }
   0x7   :  { %p1625_p0 = scmp.ne.s32.totalorder %s2094_s1, %s1624_s27  ;;  %p1628_p1 = scmp.lt.u32.totalorder %s1624_s27, %s2094_s1 }
   0x9   :  { %p1630_p2 = pnand %p1628_p1, %p1625_p0 }
   0xb   :  { %1633 = shalt.err (!%p1630_p2)
}
   0xc   :  { %s1634_s8 = scalar_lea.vmem %s36_s22, 128  ;;  %p1639_p4 = scmp.lt.s32.totalorder %s36_s22, %s36_s22 }
   0xd   :  { %p1635_p3 = scmp.ne.s32.totalorder %s36_s22, %s1634_s8  ;;  %p1640_p5 = scmp.lt.s32.totalorder %s1634_s8, %s1634_s8 }
   0xf   :  { %p1641_p6 = por %p1640_p5, %p1639_p4 }
  0x11   :  { %p1642_p7 = pnand %p1641_p6, %p1635_p3 }
  0x13   :  { %1645 = shalt.err (!%p1642_p7)
}
  0x14   :  { %38 = dma.hbm_to_vmem [thread:$0]  %s2094_s1, 128, %s36_s22, [#allocation8]  }
  0x15   :  { %s1646_s13 = scalar_lea.hbm %s2093_s0, 1024 }
  0x16   :  { %p1647_p8 = scmp.ne.s32.totalorder %s2093_s0, %s1646_s13  ;;  %p1650_p9 = scmp.lt.u32.totalorder %s1646_s13, %s2093_s0 }
  0x18   :  { %p1652_p10 = pnand %p1650_p9, %p1647_p8 }
  0x1a   :  { %1655 = shalt.err (!%p1652_p10)
}
  0x1b   :  { %s1656_s18 = scalar_lea.vmem %s1812_s24, 1024  ;;  %p1661_p12 = scmp.lt.s32.totalorder %s1812_s24, %s1812_s24 }
  0x1c   :  { %p1657_p11 = scmp.ne.s32.totalorder %s1812_s24, %s1656_s18  ;;  %p1662_p13 = scmp.lt.s32.totalorder %s1656_s18, %s1656_s18 }
  0x1e   :  { %p1663_p0 = por %p1662_p13, %p1661_p12 }
  0x20   :  { %p1664_p1 = pnand %p1663_p0, %p1657_p11 }
  0x22   :  { %1667 = shalt.err (!%p1664_p1)
}
  0x23   :  { %s1768_s1 = smov 128   ;;  %s1769_s19 = smov 8  }
  0x24   :  { %28 = dma.hbm_to_vmem [thread:$0]  %s2093_s0, 1024, %s1812_s24, [#allocation5], %s1768_s1, %s1768_s1, %s1769_s19  }
  0x25   :  { %s1770_s22 = smov [#allocation9]   ;;  %s1771_s25 = smov [#allocation10]  }
  0x26   :  { %s44_s23 = sshll.u32 %s1770_s22, 4  ;;  %s56_s26 = sshll.u32 %s1771_s25, 4  ;;  %s45_s23 = int_to_ptr.vmem [resolvable:$true] %s44_s23  ;;  %s1846_s26 = int_to_ptr.vmem [resolvable:$true] %s56_s26 }
  0x27   :  { %s1668_s29 = scalar_lea.hbm %s2095_s2, 2048 }
  0x28   :  { %p1669_p2 = scmp.ne.s32.totalorder %s2095_s2, %s1668_s29  ;;  %p1672_p3 = scmp.lt.u32.totalorder %s1668_s29, %s2095_s2 }
  0x2a   :  { %p1674_p4 = pnand %p1672_p3, %p1669_p2 }
  0x2c   :  { %1677 = shalt.err (!%p1674_p4)
}
  0x2d   :  { %s1678_s0 = scalar_lea.vmem %s45_s23, 2048  ;;  %p1683_p6 = scmp.lt.s32.totalorder %s45_s23, %s45_s23 }
  0x2e   :  { %p1679_p5 = scmp.ne.s32.totalorder %s45_s23, %s1678_s0  ;;  %p1684_p7 = scmp.lt.s32.totalorder %s1678_s0, %s1678_s0 }
  0x30   :  { %p1685_p8 = por %p1684_p7, %p1683_p6 }
  0x32   :  { %p1686_p9 = pnand %p1685_p8, %p1679_p5 }
  0x34   :  { %1689 = shalt.err (!%p1686_p9)
}
  0x35   :  { %50 = dma.hbm_to_vmem [thread:$0]  %s2095_s2, 2048, %s45_s23, [#allocation8], %s1768_s1, %s1768_s1, %s1769_s19  }
  0x36   :  { %s1690_s13 = scalar_lea.hbm %s2096_s3, 2048 }
  0x37   :  { %p1691_p10 = scmp.ne.s32.totalorder %s2096_s3, %s1690_s13  ;;  %p1694_p11 = scmp.lt.u32.totalorder %s1690_s13, %s2096_s3 }
  0x39   :  { %p1696_p12 = pnand %p1694_p11, %p1691_p10 }
  0x3b   :  { %1699 = shalt.err (!%p1696_p12)
}
  0x3c   :  { %s1700_s18 = scalar_lea.vmem %s1846_s26, 2048  ;;  %p1705_p0 = scmp.lt.s32.totalorder %s1846_s26, %s1846_s26 }
  0x3d   :  { %p1701_p13 = scmp.ne.s32.totalorder %s1846_s26, %s1700_s18  ;;  %p1706_p1 = scmp.lt.s32.totalorder %s1700_s18, %s1700_s18 }
  0x3f   :  { %p1707_p2 = por %p1706_p1, %p1705_p0 }
  0x41   :  { %p1708_p3 = pnand %p1707_p2, %p1701_p13 }
  0x43   :  { %1711 = shalt.err (!%p1708_p3)
}
  0x44   :  { %62 = dma.hbm_to_vmem [thread:$0]  %s2096_s3, 2048, %s1846_s26, [#allocation11], %s1768_s1, %s1768_s1, %s1769_s19  }
  0x45   :  { %1756 = dma.done.wait [#allocation5], 1024  }
  0x46   :  { %1757 = vsyncadd [#allocation5], 4294966272 }
  0x47   :  { %1758 = dma.done.wait [#allocation8], 2176  }
  0x48   :  { %1759 = vsyncadd [#allocation8], 4294965120 }
  0x49   :  { %1760 = dma.done.wait [#allocation11], 2048  }
  0x4a   :  { %1761 = vsyncadd [#allocation11], 4294965248  ;;  %v1772_v0 = vmov 0.0|0.0   ;;  %vm1773_vm0 = vmmov 0   ;;  %v1774_v1 = vmov 0.0   ;;  %v83_v2 = vld [vmem:[#allocation9] sm:$0xff] }
  0x4b   :  { %1373 = vmatprep.subr.bf16.mxu1 %v1772_v0  ;;  %1081 = vmatprep.mubr.msk.f32.mxu1 %vm1773_vm0, %v1774_v1  ;;  %v84_v3 = vld [vmem:[#allocation9 + $0x8] sm:$0xff]  ;;  %v85_v4 = vld [vmem:[#allocation9 + $0x10] sm:$0xff]  ;;  %v86_v6 = vld [vmem:[#allocation9 + $0x18] sm:$0xff] }
  0x4c   :  { %1421 = vmatprep.subr.bf16.mxu0 %v1772_v0  ;;  %1151 = vmatprep.mubr.msk.f32.mxu0 %vm1773_vm0, %v1774_v1  ;;  %v1889_v5 = vpack.c.bf16 %v84_v3, %v83_v2  ;;  %v1892_v7 = vpack.c.bf16 %v86_v6, %v85_v4  ;;  %v87_v8 = vld [vmem:[#allocation9 + $0x20] sm:$0xff]  ;;  %v88_v9 = vld [vmem:[#allocation9 + $0x28] sm:$0xff]  ;;  %v89_v11 = vld [vmem:[#allocation9 + $0x30] sm:$0xff] }
  0x4d   :  { %v1898_v10 = vpack.c.bf16 %v88_v9, %v87_v8  ;;  %v90_v12 = vld [vmem:[#allocation9 + $0x38] sm:$0xff]  ;;  %v91_v14 = vld [vmem:[#allocation9 + $0x40] sm:$0xff]  ;;  %v92_v15 = vld [vmem:[#allocation9 + $0x48] sm:$0xff] }
  0x4e   :  { %1375 = vmatpush3.bf16.msra.mxu1 %v1889_v5  ;;  %1423 = vmatpush3.bf16.msra.mxu0 %v1889_v5  ;;  %v1904_v13 = vpack.c.bf16 %v90_v12, %v89_v11  ;;  %v1910_v16 = vpack.c.bf16 %v92_v15, %v91_v14  ;;  %v93_v17 = vld [vmem:[#allocation9 + $0x50] sm:$0xff]  ;;  %v94_v18 = vld [vmem:[#allocation9 + $0x58] sm:$0xff]  ;;  %v95_v20 = vld [vmem:[#allocation9 + $0x60] sm:$0xff] }
  0x4f   :  { %1376 = vmatprep.subr.bf16.mxu1 %v1772_v0  ;;  %1424 = vmatprep.subr.bf16.mxu0 %v1772_v0  ;;  %v1916_v19 = vpack.c.bf16 %v94_v18, %v93_v17  ;;  %v96_v21 = vld [vmem:[#allocation9 + $0x68] sm:$0xff]  ;;  %v97_v23 = vld [vmem:[#allocation9 + $0x70] sm:$0xff]  ;;  %v98_v24 = vld [vmem:[#allocation9 + $0x78] sm:$0xff] }
  0x50   :  { %v1922_v22 = vpack.c.bf16 %v96_v21, %v95_v20  ;;  %v1928_v25 = vpack.c.bf16 %v98_v24, %v97_v23  ;;  %v81_v26 = vld [vmem:[#allocation7] sm:$0xff]  ;;  %v175_v32 = vld [vmem:[#allocation4 + $0x8] sm:$0xff]  ;;  %v251_v37 = vld [vmem:[#allocation4 + $0x10] sm:$0xff] }
  0x51   :  { %v100_v27 = vld [vmem:[#allocation4] sm:$0xff]  ;;  %v327_v42 = vld [vmem:[#allocation4 + $0x18] sm:$0xff]  ;;  %v715_v52 = vld [vmem:[#allocation10] sm:$0xff] }
  0x52   :  { %1378 = vmatpush3.bf16.msra.mxu1 %v1892_v7  ;;  %1426 = vmatpush3.bf16.msra.mxu0 %v1892_v7  ;;  %v403_v47 = vld [vmem:[#allocation4 + $0x20] sm:$0xff]  ;;  %v716_v53 = vld [vmem:[#allocation10 + $0x8] sm:$0xff]  ;;  %v479_v55 = vld [vmem:[#allocation4 + $0x28] sm:$0xff] }
  0x53   :  { %1379 = vmatprep.subr.bf16.mxu1 %v1772_v0  ;;  %1427 = vmatprep.subr.bf16.mxu0 %v1772_v0  ;;  %v1565_v54 = vpack.c.bf16 %v716_v53, %v715_v52  ;;  %v717_v59 = vld [vmem:[#allocation10 + $0x10] sm:$0xff]  ;;  %v718_v60 = vld [vmem:[#allocation10 + $0x18] sm:$0xff]  ;;  %v719_v63 = vld [vmem:[#allocation10 + $0x20] sm:$0xff] }
  0x54   :  { %v1569_v61 = vpack.c.bf16 %v718_v60, %v717_v59  ;;  %v721_v2 = vld [vmem:[#allocation10 + $0x30] sm:$0xff]  ;;  %v722_v3 = vld [vmem:[#allocation10 + $0x38] sm:$0xff]  ;;  %v724_v6 = vld [vmem:[#allocation10 + $0x48] sm:$0xff] }
  0x55   :  { %v1577_v4 = vpack.c.bf16 %v722_v3, %v721_v2  ;;  %v725_v8 = vld [vmem:[#allocation10 + $0x50] sm:$0xff]  ;;  %v726_v9 = vld [vmem:[#allocation10 + $0x58] sm:$0xff]  ;;  %v727_v11 = vld [vmem:[#allocation10 + $0x60] sm:$0xff] }
  0x56   :  { %1381 = vmatpush3.bf16.msra.mxu1 %v1898_v10  ;;  %1429 = vmatpush3.bf16.msra.mxu0 %v1898_v10  ;;  %v728_v12 = vld [vmem:[#allocation10 + $0x68] sm:$0xff]  ;;  %v729_v14 = vld [vmem:[#allocation10 + $0x70] sm:$0xff]  ;;  %v730_v15 = vld [vmem:[#allocation10 + $0x78] sm:$0xff] }
  0x57   :  { %1382 = vmatprep.subr.bf16.mxu1 %v1772_v0  ;;  %1430 = vmatprep.subr.bf16.mxu0 %v1772_v0  ;;  %v555_v17 = vld [vmem:[#allocation4 + $0x30] sm:$0xff] }
  0x5a   :  { %1384 = vmatpush3.bf16.msra.mxu1 %v1904_v13  ;;  %1432 = vmatpush3.bf16.msra.mxu0 %v1904_v13 }
  0x5b   :  { %1385 = vmatprep.subr.bf16.mxu1 %v1772_v0  ;;  %1433 = vmatprep.subr.bf16.mxu0 %v1772_v0 }
  0x5e   :  { %1387 = vmatpush3.bf16.msra.mxu1 %v1910_v16  ;;  %1435 = vmatpush3.bf16.msra.mxu0 %v1910_v16 }
  0x5f   :  { %1388 = vmatprep.subr.bf16.mxu1 %v1772_v0  ;;  %1436 = vmatprep.subr.bf16.mxu0 %v1772_v0 }
  0x62   :  { %1390 = vmatpush3.bf16.msra.mxu1 %v1916_v19  ;;  %1438 = vmatpush3.bf16.msra.mxu0 %v1916_v19 }
  0x63   :  { %1391 = vmatprep.subr.bf16.mxu1 %v1772_v0  ;;  %1439 = vmatprep.subr.bf16.mxu0 %v1772_v0 }
  0x66   :  { %1393 = vmatpush3.bf16.msra.mxu1 %v1922_v22  ;;  %1441 = vmatpush3.bf16.msra.mxu0 %v1922_v22 }
  0x67   :  { %1394 = vmatprep.subr.bf16.mxu1 %v1772_v0  ;;  %1442 = vmatprep.subr.bf16.mxu0 %v1772_v0 }
  0x6a   :  { %1396 = vmatpush3.bf16.msra.mxu1 %v1928_v25  ;;  %1444 = vmatpush3.bf16.msra.mxu0 %v1928_v25 }
  0x6b   :  { %1397 = vmatprep.subr.bf16.mxu1 %v1772_v0  ;;  %1469 = vmatprep.subr.bf16.mxu0 %v1772_v0 }
  0x6d   :  { %1082 = vmatmul.mubr.f32.vlgmr.msra.gmra.mrb[0].mxu1 %v81_v26 }
  0x6e   :  { %1399 = vmatpush3.bf16.msra.mxu1 %v1889_v5  ;;  %1116 = vmatprep.mubr.msk.f32.mxu1 %vm1773_vm0, %v1774_v1 }
  0x6f   :  { %1400 = vmatprep.subr.bf16.mxu1 %v1772_v0 }
  0x72   :  { %1402 = vmatpush3.bf16.msra.mxu1 %v1892_v7 }
  0x73   :  { %1403 = vmatprep.subr.bf16.mxu1 %v1772_v0 }
  0x76   :  { %1405 = vmatpush3.bf16.msra.mxu1 %v1898_v10 }
  0x77   :  { %1406 = vmatprep.subr.bf16.mxu1 %v1772_v0 }
  0x7a   :  { %1408 = vmatpush3.bf16.msra.mxu1 %v1904_v13 }
  0x7b   :  { %1409 = vmatprep.subr.bf16.mxu1 %v1772_v0 }
  0x7e   :  { %1411 = vmatpush3.bf16.msra.mxu1 %v1910_v16 }
  0x7f   :  { %1412 = vmatprep.subr.bf16.mxu1 %v1772_v0 }
  0x82   :  { %1414 = vmatpush3.bf16.msra.mxu1 %v1916_v19 }
  0x83   :  { %1415 = vmatprep.subr.bf16.mxu1 %v1772_v0 }
  0x86   :  { %1417 = vmatpush3.bf16.msra.mxu1 %v1922_v22 }
  0x87   :  { %1418 = vmatprep.subr.bf16.mxu1 %v1772_v0 }
  0x8a   :  { %1420 = vmatpush3.bf16.msra.mxu1 %v1928_v25 }
  0x8b   :  { %1445 = vmatprep.subr.bf16.mxu1 %v1772_v0 }
 0x140   :  { %v167_v28 = vpop.f32.mrb[0].mxu1 }
 0x141   :  { %v171_v29 = vadd.f32 %v167_v28, %v100_v27  ;;  %v1083_v30 = vpop.f32.mrb[1].mxu1 }
 0x143   :  { %1608 = vtanh.f32 %v171_v29 }
 0x14d   :  { %v1955_v31 = vpop.eup %1608 }
 0x14e   :  { %1117 = vmatmul.mubr.f32.vlgmr.msra.gmra.mrb[2].mxu1 %v1955_v31 }
 0x14f   :  { %1447 = vmatpush3.bf16.msra.mxu1 %v1889_v5  ;;  %1186 = vmatprep.mubr.msk.f32.mxu1 %vm1773_vm0, %v1774_v1 }
 0x150   :  { %1448 = vmatprep.subr.bf16.mxu1 %v1772_v0 }
 0x153   :  { %1450 = vmatpush3.bf16.msra.mxu1 %v1892_v7 }
 0x154   :  { %1451 = vmatprep.subr.bf16.mxu1 %v1772_v0 }
 0x157   :  { %1453 = vmatpush3.bf16.msra.mxu1 %v1898_v10 }
 0x158   :  { %1454 = vmatprep.subr.bf16.mxu1 %v1772_v0 }
 0x15b   :  { %1456 = vmatpush3.bf16.msra.mxu1 %v1904_v13 }
 0x15c   :  { %1457 = vmatprep.subr.bf16.mxu1 %v1772_v0 }
 0x15f   :  { %1459 = vmatpush3.bf16.msra.mxu1 %v1910_v16 }
 0x160   :  { %1460 = vmatprep.subr.bf16.mxu1 %v1772_v0 }
 0x163   :  { %1462 = vmatpush3.bf16.msra.mxu1 %v1916_v19 }
 0x164   :  { %1463 = vmatprep.subr.bf16.mxu1 %v1772_v0 }
 0x167   :  { %1465 = vmatpush3.bf16.msra.mxu1 %v1922_v22 }
 0x168   :  { %1466 = vmatprep.subr.bf16.mxu1 %v1772_v0 }
 0x16b   :  { %1468 = vmatpush3.bf16.msra.mxu1 %v1928_v25 }
 0x16c   :  { %1493 = vmatprep.subr.bf16.mxu1 %v1772_v0 }
 0x221   :  { %v242_v33 = vpop.f32.mrb[2].mxu1 }
 0x222   :  { %v246_v34 = vadd.f32 %v242_v33, %v175_v32  ;;  %v1118_v35 = vpop.f32.mrb[3].mxu1 }
 0x223   :  { %v631_v35 = vld [vmem:[#allocation4 + $0x38] sm:$0xff] }
 0x224   :  { %1610 = vtanh.f32 %v246_v34 }
 0x22e   :  { %v1976_v36 = vpop.eup %1610 }
 0x22f   :  { %1152 = vmatmul.mubr.f32.vlgmr.msra.gmra.mrb[0].mxu0 %v1976_v36 }
 0x230   :  { %1471 = vmatpush3.bf16.msra.mxu0 %v1889_v5  ;;  %1221 = vmatprep.mubr.msk.f32.mxu0 %vm1773_vm0, %v1774_v1 }
 0x231   :  { %1472 = vmatprep.subr.bf16.mxu0 %v1772_v0 }
 0x234   :  { %1474 = vmatpush3.bf16.msra.mxu0 %v1892_v7 }
 0x235   :  { %1475 = vmatprep.subr.bf16.mxu0 %v1772_v0 }
 0x238   :  { %1477 = vmatpush3.bf16.msra.mxu0 %v1898_v10 }
 0x239   :  { %1478 = vmatprep.subr.bf16.mxu0 %v1772_v0 }
 0x23c   :  { %1480 = vmatpush3.bf16.msra.mxu0 %v1904_v13 }
 0x23d   :  { %1481 = vmatprep.subr.bf16.mxu0 %v1772_v0 }
 0x240   :  { %1483 = vmatpush3.bf16.msra.mxu0 %v1910_v16 }
 0x241   :  { %1484 = vmatprep.subr.bf16.mxu0 %v1772_v0 }
 0x244   :  { %1486 = vmatpush3.bf16.msra.mxu0 %v1916_v19 }
 0x245   :  { %1487 = vmatprep.subr.bf16.mxu0 %v1772_v0 }
 0x248   :  { %1489 = vmatpush3.bf16.msra.mxu0 %v1922_v22 }
 0x249   :  { %1490 = vmatprep.subr.bf16.mxu0 %v1772_v0 }
 0x24c   :  { %1492 = vmatpush3.bf16.msra.mxu0 %v1928_v25 }
 0x24d   :  { %1517 = vmatprep.subr.bf16.mxu0 %v1772_v0 }
 0x302   :  { %v318_v38 = vpop.f32.mrb[0].mxu0 }
 0x303   :  { %v322_v39 = vadd.f32 %v318_v38, %v251_v37  ;;  %v1153_v40 = vpop.f32.mrb[1].mxu0 }
 0x305   :  { %1612 = vtanh.f32 %v322_v39 }
 0x30f   :  { %v1997_v41 = vpop.eup %1612 }
 0x310   :  { %1187 = vmatmul.mubr.f32.vlgmr.msra.gmra.mrb[4].mxu1 %v1997_v41 }
 0x311   :  { %1495 = vmatpush3.bf16.msra.mxu1 %v1889_v5  ;;  %1256 = vmatprep.mubr.msk.f32.mxu1 %vm1773_vm0, %v1774_v1 }
 0x312   :  { %1496 = vmatprep.subr.bf16.mxu1 %v1772_v0 }
 0x315   :  { %1498 = vmatpush3.bf16.msra.mxu1 %v1892_v7 }
 0x316   :  { %1499 = vmatprep.subr.bf16.mxu1 %v1772_v0 }
 0x319   :  { %1501 = vmatpush3.bf16.msra.mxu1 %v1898_v10 }
 0x31a   :  { %1502 = vmatprep.subr.bf16.mxu1 %v1772_v0 }
 0x31d   :  { %1504 = vmatpush3.bf16.msra.mxu1 %v1904_v13 }
 0x31e   :  { %1505 = vmatprep.subr.bf16.mxu1 %v1772_v0 }
 0x321   :  { %1507 = vmatpush3.bf16.msra.mxu1 %v1910_v16 }
 0x322   :  { %1508 = vmatprep.subr.bf16.mxu1 %v1772_v0 }
 0x325   :  { %1510 = vmatpush3.bf16.msra.mxu1 %v1916_v19 }
 0x326   :  { %1511 = vmatprep.subr.bf16.mxu1 %v1772_v0 }
 0x329   :  { %1513 = vmatpush3.bf16.msra.mxu1 %v1922_v22 }
 0x32a   :  { %1514 = vmatprep.subr.bf16.mxu1 %v1772_v0 }
 0x32d   :  { %1516 = vmatpush3.bf16.msra.mxu1 %v1928_v25 }
 0x32e   :  { %1541 = vmatprep.subr.bf16.mxu1 %v1772_v0 }
 0x3e3   :  { %v394_v43 = vpop.f32.mrb[4].mxu1 }
 0x3e4   :  { %v398_v44 = vadd.f32 %v394_v43, %v327_v42  ;;  %v1188_v45 = vpop.f32.mrb[5].mxu1 }
 0x3e6   :  { %1614 = vtanh.f32 %v398_v44 }
 0x3f0   :  { %v2018_v46 = vpop.eup %1614 }
 0x3f1   :  { %1222 = vmatmul.mubr.f32.vlgmr.msra.gmra.mrb[2].mxu0 %v2018_v46 }
 0x3f2   :  { %1519 = vmatpush3.bf16.msra.mxu0 %v1889_v5  ;;  %1291 = vmatprep.mubr.msk.f32.mxu0 %vm1773_vm0, %v1774_v1 }
 0x3f3   :  { %1520 = vmatprep.subr.bf16.mxu0 %v1772_v0 }
 0x3f6   :  { %1522 = vmatpush3.bf16.msra.mxu0 %v1892_v7 }
 0x3f7   :  { %1523 = vmatprep.subr.bf16.mxu0 %v1772_v0 }
 0x3fa   :  { %1525 = vmatpush3.bf16.msra.mxu0 %v1898_v10 }
 0x3fb   :  { %1526 = vmatprep.subr.bf16.mxu0 %v1772_v0 }
 0x3fe   :  { %1528 = vmatpush3.bf16.msra.mxu0 %v1904_v13 }
 0x3ff   :  { %1529 = vmatprep.subr.bf16.mxu0 %v1772_v0 }
 0x402   :  { %1531 = vmatpush3.bf16.msra.mxu0 %v1910_v16 }
 0x403   :  { %1532 = vmatprep.subr.bf16.mxu0 %v1772_v0 }
 0x406   :  { %1534 = vmatpush3.bf16.msra.mxu0 %v1916_v19 }
 0x407   :  { %1535 = vmatprep.subr.bf16.mxu0 %v1772_v0 }
 0x40a   :  { %1537 = vmatpush3.bf16.msra.mxu0 %v1922_v22 }
 0x40b   :  { %1538 = vmatprep.subr.bf16.mxu0 %v1772_v0 }
 0x40e   :  { %1540 = vmatpush3.bf16.msra.mxu0 %v1928_v25 }
 0x40f   :  { %1566 = vmatprep.subr.bf16.mxu0 %v1565_v54 }
 0x4c4   :  { %v470_v48 = vpop.f32.mrb[2].mxu0 }
 0x4c5   :  { %v474_v49 = vadd.f32 %v470_v48, %v403_v47  ;;  %v1223_v50 = vpop.f32.mrb[3].mxu0 }
 0x4c7   :  { %1616 = vtanh.f32 %v474_v49 }
 0x4d1   :  { %v2038_v51 = vpop.eup %1616 }
 0x4d2   :  { %1257 = vmatmul.mubr.f32.vlgmr.msra.gmra.mrb[6].mxu1 %v2038_v51 }
 0x4d3   :  { %1543 = vmatpush3.bf16.msra.mxu1 %v1889_v5  ;;  %1326 = vmatprep.mubr.msk.f32.mxu1 %vm1773_vm0, %v1774_v1  ;;  %v720_v1 = vld [vmem:[#allocation10 + $0x28] sm:$0xff]  ;;  %v723_v5 = vld [vmem:[#allocation10 + $0x40] sm:$0xff] }
 0x4d4   :  { %1544 = vmatprep.subr.bf16.mxu1 %v1772_v0 }
 0x4d7   :  { %1546 = vmatpush3.bf16.msra.mxu1 %v1892_v7  ;;  %v1581_v7 = vpack.c.bf16 %v724_v6, %v723_v5 }
 0x4d8   :  { %1547 = vmatprep.subr.bf16.mxu1 %v1772_v0 }
 0x4db   :  { %1549 = vmatpush3.bf16.msra.mxu1 %v1898_v10  ;;  %v1585_v10 = vpack.c.bf16 %v726_v9, %v725_v8 }
 0x4dc   :  { %1550 = vmatprep.subr.bf16.mxu1 %v1772_v0 }
 0x4df   :  { %1552 = vmatpush3.bf16.msra.mxu1 %v1904_v13  ;;  %v1589_v13 = vpack.c.bf16 %v728_v12, %v727_v11 }
 0x4e0   :  { %1553 = vmatprep.subr.bf16.mxu1 %v1772_v0 }
 0x4e3   :  { %1555 = vmatpush3.bf16.msra.mxu1 %v1910_v16  ;;  %v1593_v16 = vpack.c.bf16 %v730_v15, %v729_v14 }
 0x4e4   :  { %1556 = vmatprep.subr.bf16.mxu1 %v1772_v0 }
 0x4e7   :  { %1558 = vmatpush3.bf16.msra.mxu1 %v1916_v19 }
 0x4e8   :  { %1559 = vmatprep.subr.bf16.mxu1 %v1772_v0 }
 0x4eb   :  { %1561 = vmatpush3.bf16.msra.mxu1 %v1922_v22  ;;  %v888_v22 = vld [vmem:[%s2097_s4] ss:$0 sm:$0xff]  ;;  %s1775_s4 = smov [#allocation13]  }
 0x4ec   :  { %1562 = vmatprep.subr.bf16.mxu1 %v1772_v0  ;;  %v1573_v0 = vpack.c.bf16 %v720_v1, %v719_v63  ;;  %s873_s22 = sshll.u32 %s1775_s4, 4  ;;  %s874_s22 = int_to_ptr.vmem [resolvable:$true] %s873_s22 }
 0x4ed   :  { %s1712_s23 = scalar_lea.vmem %s874_s22, 128  ;;  %p1717_p5 = scmp.lt.s32.totalorder %s874_s22, %s874_s22 }
 0x4ee   :  { %p1713_p4 = scmp.ne.s32.totalorder %s874_s22, %s1712_s23  ;;  %p1718_p6 = scmp.lt.s32.totalorder %s1712_s23, %s1712_s23 }
 0x4ef   :  { %1564 = vmatpush3.bf16.msra.mxu1 %v1928_v25 }
 0x4f0   :  { %p1719_p7 = por %p1718_p6, %p1717_p5 }
 0x4f2   :  { %p1720_p8 = pnand %p1719_p7, %p1713_p4 }
 0x5a5   :  { %v546_v56 = vpop.f32.mrb[6].mxu1 }
 0x5a6   :  { %v550_v57 = vadd.f32 %v546_v56, %v479_v55  ;;  %v1258_v58 = vpop.f32.mrb[7].mxu1 }
 0x5a8   :  { %1618 = vtanh.f32 %v550_v57 }
 0x5b2   :  { %v1619_v62 = vpop.eup %1618 }
 0x5b3   :  { %1292 = vmatmul.mubr.f32.vlgmr.msra.gmra.mrb[4].mxu0 %v1619_v62 }
 0x5b4   :  { %1568 = vmatpush3.bf16.msra.mxu0 %v1565_v54  ;;  %1361 = vmatprep.mubr.f32.mxu0 %v1955_v31 }
 0x5b5   :  { %1570 = vmatprep.subr.bf16.mxu0 %v1569_v61 }
 0x5b8   :  { %1572 = vmatpush3.bf16.msra.mxu0 %v1569_v61 }
 0x5b9   :  { %1574 = vmatprep.subr.bf16.mxu0 %v1573_v0 }
 0x5bc   :  { %1576 = vmatpush3.bf16.msra.mxu0 %v1573_v0 }
 0x5bd   :  { %1578 = vmatprep.subr.bf16.mxu0 %v1577_v4 }
 0x5c0   :  { %1580 = vmatpush3.bf16.msra.mxu0 %v1577_v4 }
 0x5c1   :  { %1582 = vmatprep.subr.bf16.mxu0 %v1581_v7 }
 0x5c4   :  { %1584 = vmatpush3.bf16.msra.mxu0 %v1581_v7 }
 0x5c5   :  { %1586 = vmatprep.subr.bf16.mxu0 %v1585_v10 }
 0x5c8   :  { %1588 = vmatpush3.bf16.msra.mxu0 %v1585_v10 }
 0x5c9   :  { %1590 = vmatprep.subr.bf16.mxu0 %v1589_v13 }
 0x5cc   :  { %1592 = vmatpush3.bf16.msra.mxu0 %v1589_v13 }
 0x5cd   :  { %1594 = vmatprep.subr.bf16.mxu0 %v1593_v16 }
 0x5d0   :  { %1596 = vmatpush3.bf16.msra.mxu0 %v1593_v16 }
 0x5d3   :  { %1362 = vmatmul.mubr.f32.vlgmr.msra.gmra.mrb[6].mxu0 %v1976_v36 }
 0x5d4   :  { %1364 = vmatprep.mubr.f32.mxu0 %v1997_v41 }
 0x5d7   :  { %1365 = vmatmul.mubr.f32.gmra.mrb[8].mxu0 %v2018_v46 }
 0x5d8   :  { %1367 = vmatprep.mubr.f32.mxu0 %v2038_v51 }
 0x5db   :  { %1368 = vmatmul.mubr.f32.gmra.mrb[10].mxu0 %v1619_v62 }
 0x686   :  { %v622_v18 = vpop.f32.mrb[4].mxu0 }
 0x687   :  { %v626_v19 = vadd.f32 %v622_v18, %v555_v17  ;;  %v1293_v20 = vpop.f32.mrb[5].mxu0 }
 0x689   :  { %1620 = vtanh.f32 %v626_v19 }
 0x693   :  { %v1621_v21 = vpop.eup %1620 }
 0x694   :  { %1327 = vmatmul.mubr.f32.vlgmr.msra.gmra.mrb[8].mxu1 %v1621_v21  ;;  %1370 = vmatprep.mubr.f32.mxu0 %v1621_v21 }
 0x6a6   :  { %v1363_v23 = vpop.f32.mrb[6].mxu0 }
 0x6a7   :  { %v810_v24 = vadd.f32 %v1363_v23, %v888_v22  ;;  %v804_v25 = vpop.f32.mrb[7].mxu0 }
 0x6a8   :  { %v805_v26 = vadd.f32 %v888_v22, %v804_v25 }
 0x6a9   :  { %844 = vst [vmem:[#allocation12 + $0x8] sm:$0xff] %v810_v24 }
 0x6aa   :  { %843 = vst [vmem:[#allocation12] sm:$0xff] %v805_v26  ;;  %v1366_v27 = vpop.f32.mrb[8].mxu0 }
 0x6ab   :  { %v820_v28 = vadd.f32 %v1366_v27, %v888_v22  ;;  %v814_v29 = vpop.f32.mrb[9].mxu0 }
 0x6ac   :  { %v815_v30 = vadd.f32 %v888_v22, %v814_v29 }
 0x6ad   :  { %846 = vst [vmem:[#allocation12 + $0x18] sm:$0xff] %v820_v28 }
 0x6ae   :  { %845 = vst [vmem:[#allocation12 + $0x10] sm:$0xff] %v815_v30  ;;  %v1369_v31 = vpop.f32.mrb[10].mxu0 }
 0x6af   :  { %v830_v32 = vadd.f32 %v1369_v31, %v888_v22  ;;  %v824_v33 = vpop.f32.mrb[11].mxu0 }
 0x6b0   :  { %v825_v34 = vadd.f32 %v888_v22, %v824_v33 }
 0x6b1   :  { %848 = vst [vmem:[#allocation12 + $0x28] sm:$0xff] %v830_v32 }
 0x6b2   :  { %847 = vst [vmem:[#allocation12 + $0x20] sm:$0xff] %v825_v34 }
 0x767   :  { %v698_v36 = vpop.f32.mrb[8].mxu1 }
 0x768   :  { %v702_v37 = vadd.f32 %v698_v36, %v631_v35  ;;  %v1328_v38 = vpop.f32.mrb[9].mxu1 }
 0x76a   :  { %1622 = vtanh.f32 %v702_v37 }
 0x774   :  { %v1623_v39 = vpop.eup %1622 }
 0x775   :  { %854 = vst [vmem:[#allocation13] sm:$0xff] %v1623_v39  ;;  %1371 = vmatmul.mubr.f32.gmra.mrb[12].mxu0 %v1623_v39 }
 0x776   :  { %1723 = shalt.err (!%p1720_p8)
}
 0x777   :  { %s1724_s27 = scalar_lea.hbm %s2099_s6, 128 }
 0x778   :  { %p1725_p9 = scmp.ne.s32.totalorder %s2099_s6, %s1724_s27  ;;  %p1728_p10 = scmp.lt.u32.totalorder %s1724_s27, %s2099_s6 }
 0x77a   :  { %p1730_p11 = pnand %p1728_p10, %p1725_p9 }
 0x77c   :  { %1733 = shalt.err (!%p1730_p11)
}
 0x77d   :  { %876 = dma.vmem_to_hbm [thread:$0]  %s874_s22, 128, %s2099_s6, [#allocation14]  }
 0x77e   :  { %s1776_s0 = smov [#allocation12]  }
 0x77f   :  { %s860_s24 = sshll.u32 %s1776_s0, 4  ;;  %s861_s24 = int_to_ptr.vmem [resolvable:$true] %s860_s24 }
 0x780   :  { %s1734_s10 = scalar_lea.vmem %s861_s24, 1024  ;;  %p1739_p13 = scmp.lt.s32.totalorder %s861_s24, %s861_s24 }
 0x781   :  { %p1735_p12 = scmp.ne.s32.totalorder %s861_s24, %s1734_s10  ;;  %p1740_p0 = scmp.lt.s32.totalorder %s1734_s10, %s1734_s10 }
 0x783   :  { %p1741_p1 = por %p1740_p0, %p1739_p13 }
 0x785   :  { %p1742_p2 = pnand %p1741_p1, %p1735_p12 }
 0x848   :  { %v1372_v40 = vpop.f32.mrb[12].mxu0 }
 0x849   :  { %v840_v41 = vadd.f32 %v1372_v40, %v888_v22  ;;  %v834_v42 = vpop.f32.mrb[13].mxu0 }
 0x84a   :  { %v835_v43 = vadd.f32 %v888_v22, %v834_v42 }
 0x84b   :  { %850 = vst [vmem:[#allocation12 + $0x38] sm:$0xff] %v840_v41 }
 0x84c   :  { %849 = vst [vmem:[#allocation12 + $0x30] sm:$0xff] %v835_v43 }
 0x84d   :  { %1745 = shalt.err (!%p1742_p2)
}
 0x84e   :  { %s1746_s6 = scalar_lea.hbm %s2098_s5, 1024 }
 0x84f   :  { %p1747_p3 = scmp.ne.s32.totalorder %s2098_s5, %s1746_s6  ;;  %p1750_p4 = scmp.lt.u32.totalorder %s1746_s6, %s2098_s5 }
 0x851   :  { %p1752_p5 = pnand %p1750_p4, %p1747_p3 }
 0x853   :  { %1755 = shalt.err (!%p1752_p5)
}
 0x854   :  { %866 = dma.vmem_to_hbm [thread:$0]  %s861_s24, 1024, %s2098_s5, [#allocation6], %s1768_s1, %s1768_s1, %s1769_s19  }
 0x855   :  { %1762 = dma.done.wait [#allocation6], 1024  }
 0x856   :  { %1763 = vsyncadd [#allocation6], 4294966272 }
 0x857   :  { %1764 = dma.done.wait [#allocation14], 128  }
 0x858   :  { %1765 = vsyncadd [#allocation14], 4294967168 }
 0x859   :  { %883 = vsyncpa [#allocation5], 1 }
 0x85a   :  { %884 = vsyncpa [#allocation8], 1 }
 0x85b   :  { %885 = vsyncpa [#allocation11], 1 }
 0x85c   :  { %886 = vsyncpa [#allocation6], 1 }
 0x85d   :  { %887 = vsyncpa [#allocation14], 1 }

</bundles_post_ra>
